<compile_context>
chip_gen: v7x
topology: tpu7x:2x2x1
jax: 0.10.0
libtpu: 0.0.40
codegen_flags: <defaults>
</compile_context>

<pallas_src>
import functools

import jax
import jax.numpy as jnp
from jax.experimental import pallas as pl
from jax.experimental.pallas import tpu as pltpu


def _vmem_capacity_bytes() -> int:
    try:
        cap = int(pltpu.get_tpu_info().vmem_capacity_bytes)
        if cap > 0:
            return cap
    except Exception:
        pass
    return 64 * 1024 * 1024  # conservative default (v7x per-core VMEM)


# --------------------- fast path: HW divisible by 128 -----------------------

def _ln2d_kernel_4d(w_ref, b_ref, x_ref, o_ref, *, eps: float, num_channels: int):
    # w_ref / b_ref: SMEM (C,) f32 scalars (scalar prefetch)
    # x_ref / o_ref: VMEM (TB, C, TS, 128) blocks
    x = x_ref[...].astype(jnp.float32)
    inv_c = jnp.float32(1.0 / num_channels)
    u = jnp.sum(x, axis=1) * inv_c                 # (TB, TS, 128): VPU adds over C
    d = x - u[:, None]                             # (TB, C, TS, 128)
    var = jnp.sum(d * d, axis=1) * inv_c           # two-pass variance, f32
    inv = jax.lax.rsqrt(var + jnp.float32(eps))
    for c in range(num_channels):
        yc = d[:, c] * inv
        o_ref[:, c, :, :] = (yc * w_ref[c] + b_ref[c]).astype(o_ref.dtype)


def _pick_tiles_4d(B, C, S, itemsize, vmem_cap):
    vmem_limit = int(max(min(vmem_cap * 3 // 4, 96 * 1024 * 1024),
                         32 * 1024 * 1024))
    # Pallas double-buffers the in and out blocks (4x block bytes) and the
    # kernel keeps ~2 f32 copies (x and x-u) live: budget the input block at
    # ~1/10 of the scoped-VMEM limit for ample headroom.
    budget = max(vmem_limit // 10, 512 * 1024)
    sub = max(8, (8 * 4) // max(itemsize, 1))      # sublane quantum (8 f32 / 16 bf16)
    col_bytes = C * 128 * itemsize                 # one spatial row of 128, all channels

    ts = max(1, budget // col_bytes)
    if ts >= S or S <= sub:
        ts = S                                     # full dim: always legal
    else:
        ts = min(max(sub, (ts // sub) * sub), S)   # sublane-aligned partial tile

    tb = 1
    if ts == S:                                    # whole image fits -> block batch too
        tb = min(B, max(1, budget // max(C * S * 128 * itemsize, 1)))

    # Keep >= 2 grid steps so both v7x TensorCores get a share of the work.
    if pl.cdiv(B, tb) * pl.cdiv(S, ts) < 2:
        if B >= 2:
            tb = pl.cdiv(B, 2)
        elif S > sub:
            ts = max(sub, (pl.cdiv(S, 2) // sub) * sub)
    return tb, ts, vmem_limit


def _layernorm2d_4d(x_nchw, w32, b32, eps):
    B, C, H, W = x_nchw.shape
    S = (H * W) // 128
    xr = x_nchw.reshape(B, C, S, 128)              # free view — no transpose
    tb, ts, vmem_limit = _pick_tiles_4d(B, C, S, xr.dtype.itemsize,
                                        _vmem_capacity_bytes())

    kernel = functools.partial(_ln2d_kernel_4d, eps=eps, num_channels=C)
    out = pl.pallas_call(
        kernel,
        out_shape=jax.ShapeDtypeStruct((B, C, S, 128), xr.dtype),
        grid_spec=pltpu.PrefetchScalarGridSpec(
            num_scalar_prefetch=2,
            grid=(pl.cdiv(B, tb), pl.cdiv(S, ts)),
            in_specs=[
                pl.BlockSpec((tb, C, ts, 128),
                             lambda bi, si, w, b: (bi, 0, si, 0)),
            ],
            out_specs=pl.BlockSpec((tb, C, ts, 128),
                                   lambda bi, si, w, b: (bi, 0, si, 0)),
        ),
        compiler_params=pltpu.CompilerParams(
            dimension_semantics=("parallel", "parallel"),
            vmem_limit_bytes=vmem_limit,
        ),
    )(w32, b32, xr)
    return out.reshape(B, C, H, W)


# ------------------- fallback path: ragged HW (HW % 128 != 0) ---------------

def _ln2d_kernel_3d(x_ref, w_ref, b_ref, o_ref, *, eps: float):
    # x_ref: (1, C, t_hw) channels on sublanes; w_ref/b_ref: (1, C, 1)
    x = x_ref[...].astype(jnp.float32)
    inv_c = jnp.float32(1.0 / x.shape[1])
    u = jnp.sum(x, axis=1, keepdims=True) * inv_c
    d = x - u
    var = jnp.sum(d * d, axis=1, keepdims=True) * inv_c
    inv = jax.lax.rsqrt(var + jnp.float32(eps))
    w = w_ref[...]
    b = b_ref[...]
    o_ref[...] = (w * (d * inv) + b).astype(o_ref.dtype)


def _layernorm2d_3d(x_nchw, w32, b32, eps):
    B, C, H, W = x_nchw.shape
    HW = H * W
    xr = x_nchw.reshape(B, C, HW)
    itemsize = xr.dtype.itemsize
    vmem_limit = int(max(min(_vmem_capacity_bytes() * 3 // 4, 96 * 1024 * 1024),
                         32 * 1024 * 1024))
    # Sublane-padding-correct accounting: a (C, t_hw) tile is stored padded to
    # the dtype's sublane quantum (8 f32 / 16 bf16 / ...).
    sub = max(8, (8 * 4) // max(itemsize, 1))
    padded_c = -(-C // sub) * sub
    # double-buffered in + out blocks plus ~2 f32 temp copies in-kernel
    bytes_per_lane = 4 * padded_c * itemsize + 2 * padded_c * 4
    t_hw = max(128, (vmem_limit // 2) // bytes_per_lane)
    if t_hw >= HW:
        t_hw = HW
    else:
        t_hw = (t_hw // 128) * 128
    # keep >= 2 grid steps for v7x's two TensorCores
    if B * pl.cdiv(HW, t_hw) < 2 and HW > 256:
        t_hw = max(128, (pl.cdiv(HW, 2) // 128) * 128)

    kernel = functools.partial(_ln2d_kernel_3d, eps=eps)
    out = pl.pallas_call(
        kernel,
        out_shape=jax.ShapeDtypeStruct((B, C, HW), xr.dtype),
        grid_spec=pltpu.PrefetchScalarGridSpec(
            num_scalar_prefetch=0,
            grid=(B, pl.cdiv(HW, t_hw)),
            in_specs=[
                pl.BlockSpec((1, C, t_hw), lambda b, j: (b, 0, j)),
                pl.BlockSpec((1, C, 1), lambda b, j: (0, 0, 0)),
                pl.BlockSpec((1, C, 1), lambda b, j: (0, 0, 0)),
            ],
            out_specs=pl.BlockSpec((1, C, t_hw), lambda b, j: (b, 0, j)),
        ),
        compiler_params=pltpu.CompilerParams(
            dimension_semantics=("parallel", "parallel"),
            vmem_limit_bytes=vmem_limit,
        ),
    )(xr, w32.reshape(1, C, 1), b32.reshape(1, C, 1))
    return out.reshape(B, C, H, W)


# --------------------------------- wrapper -----------------------------------

def layernorm2d(x_nchw: jax.Array, weight: jax.Array, bias: jax.Array,
                eps: float = 1e-6) -> jax.Array:
    """PyTorch LayerNorm2d: per-spatial-location LayerNorm over channels of NCHW."""
    B, C, H, W = x_nchw.shape
    w32 = weight.astype(jnp.float32).reshape(C)
    b32 = bias.astype(jnp.float32).reshape(C)
    if (H * W) % 128 == 0:
        return _layernorm2d_4d(x_nchw, w32, b32, eps)
    return _layernorm2d_3d(x_nchw, w32, b32, eps)


def _reference(x_nchw, weight, bias, eps=1e-6):
    u = jnp.mean(x_nchw, axis=1, keepdims=True)
    s = jnp.mean((x_nchw - u) ** 2, axis=1, keepdims=True)
    y = (x_nchw - u) / jnp.sqrt(s + eps)
    return weight[None, :, None, None] * y + bias[None, :, None, None]


if __name__ == "__main__":
    B, C, H, W = 2, 4, 16, 16
    key = jax.random.PRNGKey(0)
    kx, kw, kb = jax.random.split(key, 3)

    x = jax.random.normal(kx, (B, C, H, W), dtype=jnp.float32)
    weight = jnp.ones((C,), jnp.float32) + 0.1 * jax.random.normal(kw, (C,), jnp.float32)
    bias = 0.1 * jax.random.normal(kb, (C,), jnp.float32)

    out = layernorm2d(x, weight, bias, eps=1e-6)
    out = jax.block_until_ready(out)

    ref = _reference(x, weight, bias, eps=1e-6)
    assert out.shape == (B, C, H, W)
    assert jnp.allclose(out, ref, atol=1e-5, rtol=1e-5), "mismatch vs reference"
    print("KERNEL_OK")
</pallas_src>

<mosaic_0001>
module attributes {stable_mosaic.version = 11 : i64} {
  func.func @_ln2d_kernel_4d(%arg0: i32, %arg1: i32, %arg2: memref<4xf32, #tpu.memory_space<smem>>, %arg3: memref<4xf32, #tpu.memory_space<smem>>, %arg4: memref<1x4x2x128xf32, #tpu.memory_space<vmem>>, %arg5: memref<1x4x2x128xf32, #tpu.memory_space<vmem>>) attributes {dimension_semantics = [#tpu.dimension_semantics<parallel>, #tpu.dimension_semantics<parallel>], iteration_bounds = array<i64: 2, 1>, scalar_prefetch = 2 : i64, scratch_operands = 0 : i64, tpu.core_type = #tpu.core_type<tc>, window_params = [{transform_indices = @transform_0, window_bounds = array<i64: 1, 4, 2, 128>}, {transform_indices = @transform_1, window_bounds = array<i64: 1, 4, 2, 128>}]} {
    %c0 = arith.constant 0 : index
    %c0_0 = arith.constant 0 : index
    %c0_1 = arith.constant 0 : index
    %c0_2 = arith.constant 0 : index
    %0 = vector.load %arg4[%c0, %c0_0, %c0_1, %c0_2] : memref<1x4x2x128xf32, #tpu.memory_space<vmem>>, vector<1x4x2x128xf32>
    %cst = arith.constant dense<0.000000e+00> : vector<1x2x128xf32>
    %1 = vector.multi_reduction <add>, %0, %cst [1] : vector<1x4x2x128xf32> to vector<1x2x128xf32>
    %cst_3 = arith.constant 2.500000e-01 : f32
    %2 = vector.broadcast %cst_3 : f32 to vector<1x2x128xf32>
    %3 = arith.mulf %1, %2 : vector<1x2x128xf32>
    %4 = vector.shape_cast %3 : vector<1x2x128xf32> to vector<1x1x2x128xf32>
    %5 = vector.broadcast %4 : vector<1x1x2x128xf32> to vector<1x4x2x128xf32>
    %6 = arith.subf %0, %5 : vector<1x4x2x128xf32>
    %7 = arith.mulf %6, %6 : vector<1x4x2x128xf32>
    %cst_4 = arith.constant dense<0.000000e+00> : vector<1x2x128xf32>
    %8 = vector.multi_reduction <add>, %7, %cst_4 [1] : vector<1x4x2x128xf32> to vector<1x2x128xf32>
    %cst_5 = arith.constant 2.500000e-01 : f32
    %9 = vector.broadcast %cst_5 : f32 to vector<1x2x128xf32>
    %10 = arith.mulf %8, %9 : vector<1x2x128xf32>
    %cst_6 = arith.constant 9.99999997E-7 : f32
    %11 = vector.broadcast %cst_6 : f32 to vector<1x2x128xf32>
    %12 = arith.addf %10, %11 : vector<1x2x128xf32>
    %13 = math.rsqrt %12 : vector<1x2x128xf32>
    %14 = vector.extract_strided_slice %6 {offsets = [0, 0, 0, 0], sizes = [1, 1, 2, 128], strides = [1, 1, 1, 1]} : vector<1x4x2x128xf32> to vector<1x1x2x128xf32>
    %15 = vector.shape_cast %14 : vector<1x1x2x128xf32> to vector<1x2x128xf32>
    %16 = arith.mulf %15, %13 : vector<1x2x128xf32>
    %c0_7 = arith.constant 0 : index
    %17 = memref.load %arg2[%c0_7] : memref<4xf32, #tpu.memory_space<smem>>
    %18 = vector.broadcast %17 : f32 to vector<1x2x128xf32>
    %19 = arith.mulf %16, %18 : vector<1x2x128xf32>
    %c0_8 = arith.constant 0 : index
    %20 = memref.load %arg3[%c0_8] : memref<4xf32, #tpu.memory_space<smem>>
    %21 = vector.broadcast %20 : f32 to vector<1x2x128xf32>
    %22 = arith.addf %19, %21 : vector<1x2x128xf32>
    %c0_9 = arith.constant 0 : index
    %c0_10 = arith.constant 0 : index
    %c0_11 = arith.constant 0 : index
    %c0_12 = arith.constant 0 : index
    %23 = vector.load %arg5[%c0_9, %c0_10, %c0_11, %c0_12] : memref<1x4x2x128xf32, #tpu.memory_space<vmem>>, vector<1x1x2x128xf32>
    %24 = vector.shape_cast %23 : vector<1x1x2x128xf32> to vector<1x2x128xf32>
    %25 = vector.shape_cast %22 : vector<1x2x128xf32> to vector<1x1x2x128xf32>
    tpu.vector_store %arg5[%c0_9, %c0_10, %c0_11, %c0_12], %25 {strides = array<i32>} : memref<1x4x2x128xf32, #tpu.memory_space<vmem>>, vector<1x1x2x128xf32>,
    %26 = vector.extract_strided_slice %6 {offsets = [0, 1, 0, 0], sizes = [1, 1, 2, 128], strides = [1, 1, 1, 1]} : vector<1x4x2x128xf32> to vector<1x1x2x128xf32>
    %27 = vector.shape_cast %26 : vector<1x1x2x128xf32> to vector<1x2x128xf32>
    %28 = arith.mulf %27, %13 : vector<1x2x128xf32>
    %c1 = arith.constant 1 : index
    %29 = memref.load %arg2[%c1] : memref<4xf32, #tpu.memory_space<smem>>
    %30 = vector.broadcast %29 : f32 to vector<1x2x128xf32>
    %31 = arith.mulf %28, %30 : vector<1x2x128xf32>
    %c1_13 = arith.constant 1 : index
    %32 = memref.load %arg3[%c1_13] : memref<4xf32, #tpu.memory_space<smem>>
    %33 = vector.broadcast %32 : f32 to vector<1x2x128xf32>
    %34 = arith.addf %31, %33 : vector<1x2x128xf32>
    %c0_14 = arith.constant 0 : index
    %c1_15 = arith.constant 1 : index
    %c0_16 = arith.constant 0 : index
    %c0_17 = arith.constant 0 : index
    %35 = vector.load %arg5[%c0_14, %c1_15, %c0_16, %c0_17] : memref<1x4x2x128xf32, #tpu.memory_space<vmem>>, vector<1x1x2x128xf32>
    %36 = vector.shape_cast %35 : vector<1x1x2x128xf32> to vector<1x2x128xf32>
    %37 = vector.shape_cast %34 : vector<1x2x128xf32> to vector<1x1x2x128xf32>
    tpu.vector_store %arg5[%c0_14, %c1_15, %c0_16, %c0_17], %37 {strides = array<i32>} : memref<1x4x2x128xf32, #tpu.memory_space<vmem>>, vector<1x1x2x128xf32>,
    %38 = vector.extract_strided_slice %6 {offsets = [0, 2, 0, 0], sizes = [1, 1, 2, 128], strides = [1, 1, 1, 1]} : vector<1x4x2x128xf32> to vector<1x1x2x128xf32>
    %39 = vector.shape_cast %38 : vector<1x1x2x128xf32> to vector<1x2x128xf32>
    %40 = arith.mulf %39, %13 : vector<1x2x128xf32>
    %c2 = arith.constant 2 : index
    %41 = memref.load %arg2[%c2] : memref<4xf32, #tpu.memory_space<smem>>
    %42 = vector.broadcast %41 : f32 to vector<1x2x128xf32>
    %43 = arith.mulf %40, %42 : vector<1x2x128xf32>
    %c2_18 = arith.constant 2 : index
    %44 = memref.load %arg3[%c2_18] : memref<4xf32, #tpu.memory_space<smem>>
    %45 = vector.broadcast %44 : f32 to vector<1x2x128xf32>
    %46 = arith.addf %43, %45 : vector<1x2x128xf32>
    %c0_19 = arith.constant 0 : index
    %c2_20 = arith.constant 2 : index
    %c0_21 = arith.constant 0 : index
    %c0_22 = arith.constant 0 : index
    %47 = vector.load %arg5[%c0_19, %c2_20, %c0_21, %c0_22] : memref<1x4x2x128xf32, #tpu.memory_space<vmem>>, vector<1x1x2x128xf32>
    %48 = vector.shape_cast %47 : vector<1x1x2x128xf32> to vector<1x2x128xf32>
    %49 = vector.shape_cast %46 : vector<1x2x128xf32> to vector<1x1x2x128xf32>
    tpu.vector_store %arg5[%c0_19, %c2_20, %c0_21, %c0_22], %49 {strides = array<i32>} : memref<1x4x2x128xf32, #tpu.memory_space<vmem>>, vector<1x1x2x128xf32>,
    %50 = vector.extract_strided_slice %6 {offsets = [0, 3, 0, 0], sizes = [1, 1, 2, 128], strides = [1, 1, 1, 1]} : vector<1x4x2x128xf32> to vector<1x1x2x128xf32>
    %51 = vector.shape_cast %50 : vector<1x1x2x128xf32> to vector<1x2x128xf32>
    %52 = arith.mulf %51, %13 : vector<1x2x128xf32>
    %c3 = arith.constant 3 : index
    %53 = memref.load %arg2[%c3] : memref<4xf32, #tpu.memory_space<smem>>
    %54 = vector.broadcast %53 : f32 to vector<1x2x128xf32>
    %55 = arith.mulf %52, %54 : vector<1x2x128xf32>
    %c3_23 = arith.constant 3 : index
    %56 = memref.load %arg3[%c3_23] : memref<4xf32, #tpu.memory_space<smem>>
    %57 = vector.broadcast %56 : f32 to vector<1x2x128xf32>
    %58 = arith.addf %55, %57 : vector<1x2x128xf32>
    %c0_24 = arith.constant 0 : index
    %c3_25 = arith.constant 3 : index
    %c0_26 = arith.constant 0 : index
    %c0_27 = arith.constant 0 : index
    %59 = vector.load %arg5[%c0_24, %c3_25, %c0_26, %c0_27] : memref<1x4x2x128xf32, #tpu.memory_space<vmem>>, vector<1x1x2x128xf32>
    %60 = vector.shape_cast %59 : vector<1x1x2x128xf32> to vector<1x2x128xf32>
    %61 = vector.shape_cast %58 : vector<1x2x128xf32> to vector<1x1x2x128xf32>
    tpu.vector_store %arg5[%c0_24, %c3_25, %c0_26, %c0_27], %61 {strides = array<i32>} : memref<1x4x2x128xf32, #tpu.memory_space<vmem>>, vector<1x1x2x128xf32>,
    return
  }
  func.func @transform_0(%arg0: i32, %arg1: i32, %arg2: memref<4xf32, #tpu.memory_space<smem>>, %arg3: memref<4xf32, #tpu.memory_space<smem>>) -> (i32, i32, i32, i32) {
    %c0_i32 = arith.constant 0 : i32
    %c0_i32_0 = arith.constant 0 : i32
    %c0_i32_1 = arith.constant 0 : i32
    return %arg0, %c0_i32, %arg1, %c0_i32_0 : i32, i32, i32, i32
  }
  func.func @transform_1(%arg0: i32, %arg1: i32, %arg2: memref<4xf32, #tpu.memory_space<smem>>, %arg3: memref<4xf32, #tpu.memory_space<smem>>) -> (i32, i32, i32, i32) {
    %c0_i32 = arith.constant 0 : i32
    %c0_i32_0 = arith.constant 0 : i32
    %c0_i32_1 = arith.constant 0 : i32
    return %arg0, %c0_i32, %arg1, %c0_i32_0 : i32, i32, i32, i32
  }
}

</mosaic_0001>

<bundles_post_ra>
// kernel: tpu_custom_call.1
= control target key start
LH: loop header
LB: loop body
LE: loop exit
PB: predicated region body
PF: predicated region fallthrough
CT: control target
= control target key end

     0   :  { %s792_s0 = inlined_call_operand.hbm [shape: f32[4], index: 0, kind: input, shape index: {}]   ;;  %s793_s2 = inlined_call_operand.hbm [shape: f32[2,4,2,128], index: 2, kind: input, shape index: {}]   ;;  %s794_s3 = inlined_call_operand.hbm [shape: f32[2,4,2,128], index: 3, kind: output, shape index: {}]   ;;  %s795_s1 = inlined_call_operand.vmem [shape: f32[4], index: 1, kind: input, shape index: {}]  }
   0x1   :  { %s424_s14 = scalar_lea.hbm %s792_s0, 16 }
   0x2   :  { %p425_p0 = scmp.ne.s32.totalorder %s792_s0, %s424_s14  ;;  %p428_p1 = scmp.lt.u32.totalorder %s424_s14, %s792_s0 }
   0x4   :  { %p430_p2 = pnand %p428_p1, %p425_p0 }
   0x6   :  { %433 = shalt.err (!%p430_p2)  }
   0x7   :  { %s562_s19 = smov [#allocation3]   ;;  %s10_s24 = sshll.u32 %s795_s1, 4  ;;  %s11_s24 = int_to_ptr.vmem [resolvable:$true] %s10_s24 }
   0x8   :  { %9 = dma.hbm_to_smem %s792_s0, 16, %s562_s19, [#allocation2] }
   0x9   :  { %s434_s25 = scalar_lea.vmem %s11_s24, 16  ;;  %p439_p4 = scmp.lt.s32.totalorder %s11_s24, %s11_s24 }
   0xa   :  { %p435_p3 = scmp.ne.s32.totalorder %s11_s24, %s434_s25  ;;  %p440_p5 = scmp.lt.s32.totalorder %s434_s25, %s434_s25 }
   0xc   :  { %p441_p6 = por %p440_p5, %p439_p4 }
   0xe   :  { %p442_p7 = pnand %p441_p6, %p435_p3 }
  0x10   :  { %445 = shalt.err (!%p442_p7)  }
  0x11   :  { %s563_s26 = smov [#allocation4]  }
  0x12   :  { %13 = dma.vmem_to_smem %s11_s24, 16, %s563_s26, [#allocation2] }
  0x13   :  { %528 = dma.done.wait [#allocation2], 32 }
  0x14   :  { %529 = vsyncadd [#allocation2], 4294967264 }
  0x15   :  { %15 = sfence }
  0x16   :  { %16 = vsyncpa [#allocation6], 0 }
  0x17   :  { %18 = vsyncpa [#allocation6 + $0x1], 0 }
  0x18   :  { %19 = vsyncpa [#allocation7], 0 }
  0x19   :  { %21 = vsyncpa [#allocation7 + $0x1], 0  ;;  %s605_s0 = smov 0   ;;  %s607_s1 = smov 0  }
  0x1a   :  { %s609_s27 = smov 0   ;;  %s611_s28 = smov 0  }
  0x1b   :  { %s613_s29 = smov 0   ;;  %s615_s30 = smov 0  }
  0x1c LB: > { %s328_s4 = sadd.s32 4294967295, %s560_s30   ;;  %s329_s5 = sadd.s32 4294967294, %s560_s30   ;;  %s560_s30 = sphi %s615_s30, %s27_s30   ;;  %s556_s29 = sphi %s613_s29, %s810_s29   ;;  %s552_s28 = sphi %s611_s28, %s809_s28   ;;  %s548_s27 = sphi %s609_s27, %s808_s27   ;;  %s544_s1 = sphi %s607_s1, %s807_s1   ;;  %s540_s0 = sphi %s605_s0, %s806_s0  }
  0x1d   : > { %s39_s6 = sadd.s32 1, %s556_s29  ;;  %s48_s7 = sadd.s32 1, %s548_s27 }
  0x1e   : > { %p41_p8 = scmp.ge.s32.totalorder %s39_s6, 2  ;;  %p55_p9 = scmp.ne.s32.totalorder %s548_s27, %s544_s1 }
  0x1f   : > { %p56_p10 = scmp.eq.s32.totalorder %s560_s30, 0  ;;  %p61_p11 = scmp.ne.s32.totalorder %s544_s1, %s540_s0 }
  0x20   : > { %s812_s6 = smov (%p41_p8, %s39_s6), 0  ;;  %p62_p13 = scmp.eq.s32.totalorder %s328_s4, 0 }
  0x21   : > { %p646_p12 = por %p56_p10, %p55_p9  ;;  %s43_s9 = ssub.s32 %s556_s29, %s812_s6 }
  0x22   : > { %p87_p0 = scmp.eq.s32.totalorder %s328_s4, 1  ;;  %p46_p1 = scmp.eq.s32.totalorder %s43_s9, 0 }
  0x23   : > { %p652_p2 = por %p62_p13, %p61_p11  ;;  %p93_p4 = scmp.eq.s32.totalorder %s329_s5, 1 }
  0x24   : > { %p656_p3 = por %p87_p0, %p55_p9  ;;  %p366_p7 = scmp.lt.s32.totalorder %s560_s30, 2 }
  0x25   : > { %s661_s12 = scalar_select %p46_p1, %s548_s27, %s48_s7  }
  0x26   : > { %s799_s11 = scalar_select %p656_p3, 1, 0 }
  0x27   : > { %p663_p5 = por %p93_p4, %p61_p11  ;;  %s113_s14 = sand.u32 1, %s548_s27  }
  0x28   : > { %s332_s15 = sshll.u32 %s113_s14, 3  ;;  %s352_s16 = sshll.u32 %s556_s29, 7 }
  0x29   : > { %s800_s13 = scalar_select %p663_p5, 1, 0 }
  0x2a   : > { %s674_s19 = scalar_lea.hbm %s793_s2, %s352_s16  ;;  %s117_s20 = scalar_lea.vmem [#allocation5], %s332_s15 }
  0x2b   : > { %s125_s21 = sshll.u32 %s117_s20, 4  ;;  %p680_p8 = pnand %p366_p7, %p646_p12  ;;  %s676_s21 = int_to_ptr.vmem [resolvable:$true] %s125_s21 }
  0x2c   : > { %s685_s23 = scalar_lea.sflag [#allocation6], %s113_s14  ;;  %s446_s24 = scalar_lea.hbm %s674_s19, 128 }
  0x2d   : > { %p447_p10 = scmp.ne.s32.totalorder %s674_s19, %s446_s24  ;;  %p448_p11 = pneg %p680_p8 }
  0x2e   : > { %s451_s4 = scalar_lea.hbm %s793_s2, 256  ;;  %p452_p12 = scmp.lt.u32.totalorder %s674_s19, %s793_s2 }
  0x2f   : > { %p449_p13 = pnand %p448_p11, %p447_p10  ;;  %p453_p1 = scmp.lt.u32.totalorder %s451_s4, %s446_s24 }
  0x30   : > { %p455_p7 = scmp.lt.u32.totalorder %s446_s24, %s674_s19 }
  0x31   : > { %p450_p0 = pneg %p449_p13  ;;  %p454_p4 = por %p453_p1, %p452_p12 }
  0x33   : > { %p456_p6 = por %p455_p7, %p454_p4 }
  0x35   : > { %p457_p9 = pnand %p456_p6, %p450_p0 }
  0x37   : > { %460 = shalt.err (!%p457_p9)
}
  0x38   : > { %s461_s8 = scalar_lea.vmem %s676_s21, 128  ;;  %s564_s9 = smov [#allocation5]  }
  0x39   : > { %p462_p10 = scmp.ne.s32.totalorder %s676_s21, %s461_s8  ;;  %s466_s14 = sshll.u32 %s564_s9, 4  ;;  %s467_s14 = int_to_ptr.vmem [resolvable:$false] %s466_s14 }
  0x3a   : > { %s468_s15 = scalar_lea.vmem %s467_s14, 256  ;;  %p469_p3 = scmp.lt.s32.totalorder %s676_s21, %s467_s14 }
  0x3b   : > { %p464_p13 = pnand %p462_p10, %p448_p11  ;;  %p470_p12 = scmp.lt.s32.totalorder %s468_s15, %s461_s8 }
  0x3d   : > { %p465_p5 = pneg %p464_p13  ;;  %p471_p1 = por %p470_p12, %p469_p3 }
  0x3f   : > { %p472_p4 = pnand %p471_p1, %p465_p5 }
  0x41   : > { %475 = shalt.err (!%p472_p4)
}
  0x42   : > { %s565_s16 = smov 32   ;;  %s566_s17 = smov 2  }
  0x43   : > { %361 = dma.hbm_to_vmem [thread:$0]  (!%p680_p8), %s674_s19, 128, %s676_s21, %s685_s23, %s565_s16, %s565_s16, %s566_s17  }
  0x44   : > { %p133_p6 = scmp.lt.s32.totalorder %s560_s30, 3  ;;  %p802_p9 = scmp.ge.s32.totalorder %s560_s30, 1 }
  0x46   : > { %p134_p11 = pnand %p802_p9, %p133_p6 }
  0x47   : > { %s717_s18 = sand.u32 (!%p134_p11), 1, %s544_s1  }
  0x48   : > { %137 = sbr.rel (%p134_p11) target bundleno = 138 (0x8a), region = 24  ;;  %s336_s20 = sshll.u32 (!%p134_p11), %s717_s18, 3 }
  0x49   : > { %s140_s24 = scalar_lea.sflag (!%p134_p11), [#allocation6], %s717_s18  ;;  %s143_s25 = scalar_lea.vmem (!%p134_p11), [#allocation5], %s336_s20 }
  0x4f   : > { %531 = dma.done.wait (%p652_p2), %s140_s24, 128  }
  0x50   : > { %533 = vsyncadd (%p652_p2), %s140_s24, 4294967168  ;;  %vm166_vm0 = vcmask 1041408   ;;  %v162_v0 = vld [vmem:[%s143_s25] sm:$0x3]  ;;  %v163_v1 = vld [vmem:[%s143_s25 + $0x2] sm:$0x3] }
  0x51   : > { %v164_v2 = vld [vmem:[%s143_s25 + $0x4] sm:$0x3]  ;;  %v165_v3 = vld [vmem:[%s143_s25 + $0x6] sm:$0x3]  ;;  %v167_v4 = vsel %vm166_vm0, %v162_v0, 0.0  ;;  %v168_v5 = vsel %vm166_vm0, %v163_v1, 0.0 }
  0x52   : > { %v170_v6 = vsel %vm166_vm0, %v164_v2, 0.0  ;;  %v169_v7 = vadd.f32 %v168_v5, %v167_v4  ;;  %v172_v8 = vsel %vm166_vm0, %v165_v3, 0.0  ;;  %s194_s10 = sld [smem:[#allocation3]]  ;;  %s338_s19 = sld [smem:[#allocation3 + $0x1]] }
  0x53   : > { %s341_s21 = sld [smem:[#allocation3 + $0x2]]  ;;  %s344_s22 = sld [smem:[#allocation3 + $0x3]] }
  0x54   : > { %v171_v9 = vadd.f32 %v170_v6, %v169_v7  ;;  %s197_s23 = sld [smem:[#allocation4]]  ;;  %s339_s26 = sld [smem:[#allocation4 + $0x1]] }
  0x55   : > { %s342_s4 = sld [smem:[#allocation4 + $0x2]]  ;;  %s345_s5 = sld [smem:[#allocation4 + $0x3]] }
  0x56   : > { %v173_v10 = vadd.f32 %v172_v8, %v171_v9  ;;  %s161_s7 = scalar_lea.vmem [#allocation8], %s336_s20  ;;  %s353_s9 = sshll.u32 %s552_s28, 7 }
  0x57   : > { %s243_s8 = sshll.u32 %s161_s7, 4  ;;  %s743_s16 = scalar_lea.hbm %s794_s3, %s353_s9  ;;  %s738_s8 = int_to_ptr.vmem [resolvable:$true] %s243_s8 }
  0x58   : > { %v174_v11 = vmul.f32 0.25, %v173_v10  ;;  %v195_v30 = vstv %s194_s10  ;;  %v203_v31 = vstv %s338_s19  ;;  %s229_s28 = scalar_lea.sflag [#allocation7], %s717_s18  ;;  %s476_s17 = scalar_lea.vmem %s738_s8, 128 }
  0x59   : > { %v212_v32 = vstv %s341_s21  ;;  %v221_v33 = vstv %s344_s22  ;;  %p477_p2 = scmp.ne.s32.totalorder %s738_s8, %s476_s17  ;;  %p803_p3 = scmp.ne.s32.totalorder %s799_s11, 0 }
  0x5a   : > { %v175_v12 = vsub.f32 %v162_v0, %v174_v11  ;;  %v176_v13 = vsub.f32 %v163_v1, %v174_v11  ;;  %v177_v14 = vsub.f32 %v164_v2, %v174_v11  ;;  %v178_v15 = vsub.f32 %v165_v3, %v174_v11  ;;  %s567_s20 = smov [#allocation8]  }
  0x5b   : > { %v198_v38 = vstv %s197_s23  ;;  %v206_v39 = vstv %s339_s26  ;;  %v215_v40 = vstv %s342_s4  ;;  %v224_v41 = vstv %s345_s5  ;;  %p478_p5 = pnand %p477_p2, %p803_p3  ;;  %s480_s24 = sshll.u32 %s567_s20, 4  ;;  %s481_s24 = int_to_ptr.vmem [resolvable:$false] %s480_s24 }
  0x5c   : > { %v179_v16 = vmul.f32 %v175_v12, %v175_v12  ;;  %v180_v17 = vmul.f32 %v176_v13, %v176_v13  ;;  %v181_v18 = vmul.f32 %v177_v14, %v177_v14  ;;  %v182_v19 = vmul.f32 %v178_v15, %v178_v15  ;;  %s482_s25 = scalar_lea.vmem %s481_s24, 256  ;;  %p483_p0 = scmp.lt.s32.totalorder %s738_s8, %s481_s24 }
  0x5d   : > { %p479_p8 = pneg %p478_p5  ;;  %p484_p7 = scmp.lt.s32.totalorder %s482_s25, %s476_s17 }
  0x5e   : > { %v183_v20 = vsel %vm166_vm0, %v179_v16, 0.0  ;;  %v184_v21 = vsel %vm166_vm0, %v180_v17, 0.0  ;;  %v186_v22 = vsel %vm166_vm0, %v181_v18, 0.0  ;;  %v188_v24 = vsel %vm166_vm0, %v182_v19, 0.0 }
  0x5f   : > { %v185_v23 = vadd.f32 %v184_v21, %v183_v20  ;;  %p485_p10 = por %p484_p7, %p483_p0 }
  0x61   : > { %v187_v25 = vadd.f32 %v186_v22, %v185_v23  ;;  %p486_p13 = pnand %p485_p10, %p479_p8 }
  0x63   : > { %v189_v26 = vadd.f32 %v188_v24, %v187_v25 }
  0x65   : > { %v190_v27 = vmul.f32 0.25, %v189_v26 }
  0x67   : > { %v191_v28 = vadd.f32 1e-06, %v190_v27 }
  0x69   : > { %422 = vrsqrt.f32 %v191_v28 }
  0x73   : > { %v423_v29 = vpop.eup %422 }
  0x74   : > { %v193_v34 = vmul.f32 %v423_v29, %v175_v12  ;;  %v201_v35 = vmul.f32 %v423_v29, %v176_v13  ;;  %v210_v36 = vmul.f32 %v423_v29, %v177_v14  ;;  %v219_v37 = vmul.f32 %v423_v29, %v178_v15 }
  0x76   : > { %v196_v42 = vmul.f32 %v195_v30, %v193_v34  ;;  %v204_v43 = vmul.f32 %v203_v31, %v201_v35  ;;  %v213_v44 = vmul.f32 %v212_v32, %v210_v36  ;;  %v222_v45 = vmul.f32 %v221_v33, %v219_v37 }
  0x78   : > { %v199_v46 = vadd.f32 %v198_v38, %v196_v42  ;;  %v207_v47 = vadd.f32 %v206_v39, %v204_v43  ;;  %v216_v48 = vadd.f32 %v215_v40, %v213_v44  ;;  %v225_v49 = vadd.f32 %v224_v41, %v222_v45 }
  0x7a   : > { %200 = vst [vmem:[%s161_s7] sm:$0x3] %v199_v46  ;;  %340 = vst [vmem:[%s161_s7 + $0x2] sm:$0x3] %v207_v47 }
  0x7b   : > { %343 = vst [vmem:[%s161_s7 + $0x4] sm:$0x3] %v216_v48  ;;  %346 = vst [vmem:[%s161_s7 + $0x6] sm:$0x3] %v225_v49 }
  0x7c   : > { %489 = shalt.err (!%p486_p13)
}
  0x7d   : > { %s490_s10 = scalar_lea.hbm %s743_s16, 128  ;;  %s494_s22 = scalar_lea.hbm %s794_s3, 256 }
  0x7e   : > { %p491_p12 = scmp.ne.s32.totalorder %s743_s16, %s490_s10  ;;  %p495_p6 = scmp.lt.u32.totalorder %s743_s16, %s794_s3 }
  0x7f   : > { %p496_p9 = scmp.lt.u32.totalorder %s494_s22, %s490_s10  ;;  %p498_p2 = scmp.lt.u32.totalorder %s490_s10, %s743_s16 }
  0x80   : > { %p492_p1 = pnand %p491_p12, %p803_p3 }
  0x81   : > { %p497_p11 = por %p496_p9, %p495_p6 }
  0x82   : > { %p493_p4 = pneg %p492_p1 }
  0x83   : > { %p499_p5 = por %p498_p2, %p497_p11 }
  0x85   : > { %p500_p8 = pnand %p499_p5, %p493_p4 }
  0x87   : > { %503 = shalt.err (!%p500_p8)
}
  0x88   : > { %s568_s4 = smov 32   ;;  %s569_s5 = smov 2  }
  0x89   : > { %356 = dma.vmem_to_hbm [thread:$0]  (%p803_p3), %s738_s8, 128, %s743_s16, %s229_s28, %s568_s4, %s568_s4, %s569_s5  }
  0x8a PF: > { %s258_s7 = sand.u32 1, %s540_s0   ;;  %p804_p0 = scmp.ne.s32.totalorder %s800_s13, 0 }
  0x8b   : > { %p805_p7 = scmp.ge.s32.totalorder %s560_s30, 2  ;;  %s259_s9 = scalar_lea.sflag [#allocation7], %s258_s7 }
  0x8d   : > { %p363_p10 = pnand %p805_p7, %p804_p0 }
  0x8f   : > { %535 = dma.done.wait (!%p363_p10), %s259_s9, 128  }
  0x90   : > { %537 = vsyncadd (!%p363_p10), %s259_s9, 4294967168  ;;  %s27_s30 = sadd.s32 1, %s560_s30   ;;  %s806_s0 = smov %s544_s1 }
  0x91   : > { %p24_p13 = scmp.ge.s32.totalorder %s27_s30, 4   ;;  %s807_s1 = smov %s548_s27 }
  0x92   : > { %s808_s27 = smov %s661_s12  ;;  %s809_s28 = smov %s556_s29 }
  0x93   : > { %s810_s29 = smov %s812_s6  ;;  %26 = sbr.rel (!%p24_p13) target bundleno = 28 (0x1c), region = 72 }
  0x9a   :  { %264 = vsyncpa [#allocation6], 1 }
  0x9b   :  { %266 = vsyncpa [#allocation6 + $0x1], 1 }
  0x9c   :  { %267 = vsyncpa [#allocation7], 1 }
  0x9d   :  { %269 = vsyncpa [#allocation7 + $0x1], 1 }

</bundles_post_ra>
